<compile_context>
chip_gen: v7x
topology: tpu7x:2x2x1
jax: 0.10.0
libtpu: 0.0.40
codegen_flags: <defaults>
</compile_context>

<pallas_src>
import math

import jax
import jax.numpy as jnp
from jax import lax
from jax.experimental import pallas as pl
from jax.experimental.pallas import tpu as pltpu


# ------------------------------ small helpers -------------------------------

def _tile(dim, pref, align):
    """Largest tile <= pref that is a multiple of `align` and divides dim, else full dim."""
    dim = int(dim)
    if dim <= pref:
        return dim
    t = (pref // align) * align
    while t >= align:
        if dim % t == 0:
            return t
        t -= align
    return dim   # fallback: single full block (perf fallback only)


def _sublane(dtype):
    """Sublane alignment for M-tiles: 16 for bf16 packing, 8 otherwise."""
    return 16 if jnp.dtype(dtype) == jnp.dtype(jnp.bfloat16) else 8


_VMEM_LIMIT_CACHE = [None]


def _vmem_limit():
    """Generation-aware VMEM budget: 3/4 of physical (capped at 96 MiB), fallback 64 MiB."""
    if _VMEM_LIMIT_CACHE[0] is None:
        try:
            cap = pltpu.get_tpu_info().vmem_capacity_bytes
            _VMEM_LIMIT_CACHE[0] = min(int(cap * 3 // 4), 96 * 1024 * 1024)
        except Exception:
            _VMEM_LIMIT_CACHE[0] = 64 * 1024 * 1024
    return _VMEM_LIMIT_CACHE[0]


def _cparams(*sem):
    return pltpu.CompilerParams(dimension_semantics=sem, vmem_limit_bytes=_vmem_limit())


def _erf_f32(x):
    # Abramowitz & Stegun 7.1.26 (|err| < 1.5e-7) built from Mosaic-supported primitives.
    a1, a2, a3, a4, a5 = (0.254829592, -0.284496736, 1.421413741,
                          -1.453152027, 1.061405429)
    p = 0.3275911
    sgn = jnp.where(x >= 0.0, 1.0, -1.0)
    ax = jnp.abs(x)
    t = 1.0 / (1.0 + p * ax)
    poly = ((((a5 * t + a4) * t + a3) * t + a2) * t + a1) * t
    return sgn * (1.0 - poly * jnp.exp(-ax * ax))


def _gelu_f32(x):
    return 0.5 * x * (1.0 + _erf_f32(x * (1.0 / math.sqrt(2.0))))


def _layernorm_f32(x, g, b, eps):
    mu = jnp.mean(x, axis=-1, keepdims=True)
    xc = x - mu
    var = jnp.mean(xc * xc, axis=-1, keepdims=True)
    inv = lax.rsqrt(var + eps)
    return xc * inv * g + b


# --------------------- fused LayerNorm + projection kernel -------------------
# Used for the Q projection (n_out=1) and the fused K/V projections (n_out=2):
# the input row block is read once, LayerNormed in the prologue, and fed to one
# or two matmuls (K = d_model fits a single K tile, so no reduction grid axis).

def _make_ln_linear_kernel(n_out, eps):
    def kernel(*refs):
        x_ref, g_ref, bln_ref = refs[:3]
        wb = refs[3:3 + 2 * n_out]
        outs = refs[3 + 2 * n_out:]
        x = x_ref[...].astype(jnp.float32)
        y32 = _layernorm_f32(x, g_ref[...], bln_ref[...], eps)
        xn = y32.astype(wb[0].dtype)            # MXU operand dtype
        for t in range(n_out):
            w_ref, b_ref, o_ref = wb[2 * t], wb[2 * t + 1], outs[t]
            y = jnp.dot(xn, w_ref[...], preferred_element_type=jnp.float32) + b_ref[...]
            o_ref[...] = y.astype(o_ref.dtype)
    return kernel


def pallas_ln_linear(x, g, b, wbs, *, eps=1e-5, out_dtype=None, tm=512, tn=512):
    """outs[t] = LN(x) @ wbs[t][0] + wbs[t][1];  x:[M,D] (f32), w_t:[D,N], bias:[1,N] f32."""
    M, D = x.shape
    N = wbs[0][0].shape[1]
    n_out = len(wbs)
    out_dtype = out_dtype or x.dtype
    tm = _tile(M, tm, _sublane(wbs[0][0].dtype))
    tn = _tile(N, tn, 128)
    grid = (M // tm, N // tn)

    in_specs = [pl.BlockSpec((tm, D), lambda i, j: (i, 0)),
                pl.BlockSpec((1, D), lambda i, j: (0, 0)),
                pl.BlockSpec((1, D), lambda i, j: (0, 0))]
    args = [x, g, b]
    for w_t, bias in wbs:
        in_specs.append(pl.BlockSpec((D, tn), lambda i, j: (0, j)))
        in_specs.append(pl.BlockSpec((1, tn), lambda i, j: (0, j)))
        args.extend([w_t, bias])

    out_shape = tuple(jax.ShapeDtypeStruct((M, N), out_dtype) for _ in range(n_out))
    out_specs = tuple(pl.BlockSpec((tm, tn), lambda i, j: (i, j)) for _ in range(n_out))

    return pl.pallas_call(
        _make_ln_linear_kernel(n_out, eps),
        out_shape=out_shape,
        grid=grid,
        in_specs=in_specs,
        out_specs=out_specs,
        compiler_params=_cparams("parallel", "parallel"),
    )(*args)


# ------------------------------ plain Linear kernel --------------------------
# Used for the attention output projection (bias fused into the accumulator init).

def _linear_kernel(x_ref, w_ref, b_ref, o_ref, acc_ref):
    k = pl.program_id(2)

    @pl.when(k == 0)
    def _init():
        acc_ref[...] = jnp.broadcast_to(b_ref[...], acc_ref.shape)

    acc_ref[...] += jnp.dot(x_ref[...], w_ref[...], preferred_element_type=jnp.float32)

    @pl.when(k == pl.num_programs(2) - 1)
    def _finalize():
        o_ref[...] = acc_ref[...].astype(o_ref.dtype)


def pallas_linear(x, w_t, b, *, out_dtype=None, tm=512, tn=512, tk=1024):
    """y = x @ w_t + b;  x:[M,Din], w_t:[Din,Dout], b:[1,Dout] f32."""
    M, Din = x.shape
    Dout = w_t.shape[1]
    out_dtype = out_dtype or x.dtype
    tm = _tile(M, tm, _sublane(w_t.dtype))
    tn = _tile(Dout, tn, 128)
    tk = _tile(Din, tk, 128)
    grid = (M // tm, Dout // tn, Din // tk)

    return pl.pallas_call(
        _linear_kernel,
        out_shape=jax.ShapeDtypeStruct((M, Dout), out_dtype),
        grid=grid,
        in_specs=[pl.BlockSpec((tm, tk), lambda i, j, k: (i, k)),
                  pl.BlockSpec((tk, tn), lambda i, j, k: (k, j)),
                  pl.BlockSpec((1, tn), lambda i, j, k: (0, j))],
        out_specs=pl.BlockSpec((tm, tn), lambda i, j, k: (i, j)),
        scratch_shapes=[pltpu.VMEM((tm, tn), jnp.float32)],
        compiler_params=_cparams("parallel", "parallel", "arbitrary"),
    )(x, w_t, b)


# ------------------------------ fused FFN kernel ------------------------------
# One kernel for LayerNorm -> W1 -> act -> W2 -> +bias +residual.
# Grid: (M tiles, d_ff tiles).  The normalized row block xn is cached in VMEM scratch
# at j==0; the [M, d_ff] hidden tensor never touches HBM.  The residual and the final
# bias are folded into the accumulator init.

def _make_ffn_kernel(activation, eps):
    def kernel(x_ref, g_ref, bln_ref, w1_ref, b1_ref, w2_ref, b2_ref,
               o_ref, acc_ref, xn_ref):
        j = pl.program_id(1)

        @pl.when(j == 0)
        def _init():
            x = x_ref[...].astype(jnp.float32)
            xn_ref[...] = _layernorm_f32(x, g_ref[...], bln_ref[...], eps).astype(xn_ref.dtype)
            acc_ref[...] = x + b2_ref[...]          # residual + final bias

        h = jnp.dot(xn_ref[...], w1_ref[...], preferred_element_type=jnp.float32) + b1_ref[...]
        if activation == "gelu":
            h = _gelu_f32(h)
        else:
            h = jnp.maximum(h, 0.0)
        acc_ref[...] += jnp.dot(h.astype(w2_ref.dtype), w2_ref[...],
                                preferred_element_type=jnp.float32)

        @pl.when(j == pl.num_programs(1) - 1)
        def _finalize():
            o_ref[...] = acc_ref[...].astype(o_ref.dtype)

    return kernel


def pallas_ffn(x, g, b, w1_t, b1, w2_t, b2, *, activation="gelu",
               compute_dtype=jnp.float32, out_dtype=jnp.float32,
               eps=1e-5, tm=256, tf=512):
    """out = (act(LN(x) @ w1_t + b1) @ w2_t + b2) + x;  x:[M,D] f32."""
    M, D = x.shape
    d_ff = w1_t.shape[1]
    tm = _tile(M, tm, _sublane(compute_dtype))
    tf = _tile(d_ff, tf, 128)
    grid = (M // tm, d_ff // tf)

    return pl.pallas_call(
        _make_ffn_kernel(activation, eps),
        out_shape=jax.ShapeDtypeStruct((M, D), out_dtype),
        grid=grid,
        in_specs=[pl.BlockSpec((tm, D), lambda i, j: (i, 0)),
                  pl.BlockSpec((1, D), lambda i, j: (0, 0)),
                  pl.BlockSpec((1, D), lambda i, j: (0, 0)),
                  pl.BlockSpec((D, tf), lambda i, j: (0, j)),
                  pl.BlockSpec((1, tf), lambda i, j: (0, j)),
                  pl.BlockSpec((tf, D), lambda i, j: (j, 0)),
                  pl.BlockSpec((1, D), lambda i, j: (0, 0))],
        out_specs=pl.BlockSpec((tm, D), lambda i, j: (i, 0)),
        scratch_shapes=[pltpu.VMEM((tm, D), jnp.float32),
                        pltpu.VMEM((tm, D), compute_dtype)],
        compiler_params=_cparams("parallel", "arbitrary"),
    )(x, g, b, w1_t, b1, w2_t, b2)


# ------------------------------ Attention kernel ----------------------------

def _make_attention_kernel(th, dk):
    def kernel(q_ref, k_ref, v_ref, ctx_ref, attn_ref, ctx_sc):
        # q already carries the 1/sqrt(dk) scale (folded into the Q projection weights).
        for h in range(th):
            lo = h * dk
            qh = q_ref[0, :, lo:lo + dk]            # [tq, dk]   (ref-indexed load)
            kh = k_ref[0, :, lo:lo + dk]            # [S_kv, dk]
            vh = v_ref[0, :, lo:lo + dk]            # [S_kv, dk]
            # contract dk of both operands -> no explicit K transpose (no XLU transpose)
            s = lax.dot_general(qh, kh, (((1,), (1,)), ((), ())),
                                preferred_element_type=jnp.float32)   # [tq, S_kv]
            m = jnp.max(s, axis=-1, keepdims=True)
            e = jnp.exp(s - m)
            inv = pl.reciprocal(jnp.sum(e, axis=-1, keepdims=True), approx=False)
            p = e * inv                              # rows sum to 1 (exact reciprocal)
            attn_ref[0, h] = p.astype(attn_ref.dtype)
            ctx_sc[:, lo:lo + dk] = jnp.dot(p.astype(vh.dtype), vh,
                                            preferred_element_type=jnp.float32)
        # single lane-dense [tq, th*dk] store, already in [B, S, D] layout
        ctx_ref[0] = ctx_sc[...].astype(ctx_ref.dtype)
    return kernel


def _pick_head_tile(n_head, dk, s_kv, tq, *, io_bytes, attn_bytes,
                    budget=12 * 1024 * 1024):
    """Largest head tile whose double-buffered per-step footprint stays under budget."""
    valid = [t for t in range(n_head, 0, -1)
             if n_head % t == 0 and (t == n_head or (t * dk) % 128 == 0)]
    for t in valid:
        foot = 2 * ((tq + 2 * s_kv + tq) * t * dk * io_bytes   # q + k + v + ctx blocks
                    + t * tq * s_kv * attn_bytes)              # attn block
        if foot <= budget:
            return t
    return valid[-1]


def pallas_attention(q_proj, k_proj, v_proj, *, n_head, out_dtype=None,
                     attn_dtype=jnp.float32, tq=256, th=None):
    """q_proj:[B,S_q,D] (pre-scaled), k/v_proj:[B,S_kv,D] -> (ctx [B,S_q,D], attn [B,H,S_q,S_kv])."""
    B, S_q, D = q_proj.shape
    S_kv = k_proj.shape[1]
    dk = D // n_head
    out_dtype = out_dtype or q_proj.dtype
    tq = _tile(S_q, tq, _sublane(q_proj.dtype))
    if th is None:
        th = _pick_head_tile(n_head, dk, S_kv, tq,
                             io_bytes=jnp.dtype(q_proj.dtype).itemsize,
                             attn_bytes=jnp.dtype(attn_dtype).itemsize)
    hd = th * dk
    grid = (B, n_head // th, S_q // tq)   # q-tiles innermost -> K/V blocks stay resident

    return pl.pallas_call(
        _make_attention_kernel(th, dk),
        out_shape=(
            jax.ShapeDtypeStruct((B, S_q, D), out_dtype),
            jax.ShapeDtypeStruct((B, n_head, S_q, S_kv), attn_dtype),
        ),
        grid=grid,
        in_specs=[
            pl.BlockSpec((1, tq, hd), lambda b, hi, qi: (b, qi, hi)),
            pl.BlockSpec((1, S_kv, hd), lambda b, hi, qi: (b, 0, hi)),
            pl.BlockSpec((1, S_kv, hd), lambda b, hi, qi: (b, 0, hi)),
        ],
        out_specs=(
            pl.BlockSpec((1, tq, hd), lambda b, hi, qi: (b, qi, hi)),
            pl.BlockSpec((1, th, tq, S_kv), lambda b, hi, qi: (b, hi, qi, 0)),
        ),
        scratch_shapes=[pltpu.VMEM((tq, hd), jnp.float32)],
        compiler_params=_cparams("parallel", "parallel", "parallel"),
    )(q_proj, k_proj, v_proj)


# --------------------------- parameter preparation ---------------------------

def prepare_params(params, *, n_head, compute_dtype=jnp.float32):
    """Precompute transposed / scaled weights once (outside the forward path)."""
    d_model = params["attn"]["q"]["W"].shape[1]
    dk = d_model // n_head
    scale = 1.0 / math.sqrt(dk)
    cd = compute_dtype

    def row(v):
        return v.reshape(1, -1).astype(jnp.float32)

    mha, ffn = params["attn"], params["ffn"]
    return {
        "n_head": n_head,
        "ln_q_g": row(params["norm_q"]["g"]), "ln_q_b": row(params["norm_q"]["b"]),
        "ln_kv_g": row(params["norm_kv"]["g"]), "ln_kv_b": row(params["norm_kv"]["b"]),
        # 1/sqrt(dk) folded into the Q projection
        "wq_t": (mha["q"]["W"].T * scale).astype(cd), "bq": row(mha["q"]["b"] * scale),
        "wk_t": mha["k"]["W"].T.astype(cd), "bk": row(mha["k"]["b"]),
        "wv_t": mha["v"]["W"].T.astype(cd), "bv": row(mha["v"]["b"]),
        "wo_t": mha["o"]["W"].T.astype(cd), "bo": row(mha["o"]["b"]),
        "ln_f_g": row(ffn["norm"]["g"]), "ln_f_b": row(ffn["norm"]["b"]),
        "w1_t": ffn["w1"]["W"].T.astype(cd), "b1": row(ffn["w1"]["b"]),
        "w2_t": ffn["w2"]["W"].T.astype(cd), "b2": row(ffn["w2"]["b"]),
    }


# --------------------------- FuseFeatureBlock forward ------------------------

def fuse_feature_block(prep, memory, q, *, act="gelu",
                       compute_dtype=jnp.float32, attn_dtype=jnp.float32):
    """Forward pass of FuseFeatureBlock. Returns (out [B,S_q,D], attn [B,H,S_q,S_kv])."""
    act = act.lower()
    if act not in ("gelu", "relu"):
        raise ValueError("Unsupported activation: %s" % act)
    B, S_kv, D = memory.shape
    S_q = q.shape[1]
    n_head = prep["n_head"]
    cd = compute_dtype

    mem2 = memory.reshape(B * S_kv, D)
    q2 = q.reshape(B * S_q, D)

    # --- LN_q fused into the Q projection (1/sqrt(dk) folded into its weights) ---
    (q_proj,) = pallas_ln_linear(q2, prep["ln_q_g"], prep["ln_q_b"],
                                 [(prep["wq_t"], prep["bq"])], out_dtype=cd)
    # --- LN_kv fused into K and V projections (memory read once) ---
    k_proj, v_proj = pallas_ln_linear(mem2, prep["ln_kv_g"], prep["ln_kv_b"],
                                      [(prep["wk_t"], prep["bk"]),
                                       (prep["wv_t"], prep["bv"])], out_dtype=cd)

    # --- Attention: per-head ref loads, ctx written lane-dense in [B,S,D] layout ---
    ctx, attn = pallas_attention(q_proj.reshape(B, S_q, D),
                                 k_proj.reshape(B, S_kv, D),
                                 v_proj.reshape(B, S_kv, D),
                                 n_head=n_head, out_dtype=cd, attn_dtype=attn_dtype)

    # --- Output projection (keep f32 for the residual path) ---
    attn_out = pallas_linear(ctx.reshape(B * S_q, D), prep["wo_t"], prep["bo"],
                             out_dtype=jnp.float32)

    # --- Fused FFN: LN -> W1 -> act -> W2 -> +bias +residual, hidden never hits HBM ---
    out = pallas_ffn(attn_out, prep["ln_f_g"], prep["ln_f_b"],
                     prep["w1_t"], prep["b1"], prep["w2_t"], prep["b2"],
                     activation=act, compute_dtype=cd, out_dtype=jnp.float32)
    return out.reshape(B, S_q, D), attn


# ------------------------------- Parameters ----------------------------------

def init_params(key, d_model, d_ff):
    """Deterministic init mimicking nn.Linear / nn.LayerNorm (LN slightly randomized)."""
    def linear_init(k, fan_in, fan_out):
        bound = 1.0 / math.sqrt(fan_in)
        kw, kb = jax.random.split(k)
        return {"W": jax.random.uniform(kw, (fan_out, fan_in), jnp.float32, -bound, bound),
                "b": jax.random.uniform(kb, (fan_out,), jnp.float32, -bound, bound)}

    def ln_init(k):
        kg, kb = jax.random.split(k)
        return {"g": 1.0 + 0.1 * jax.random.normal(kg, (d_model,), jnp.float32),
                "b": 0.1 * jax.random.normal(kb, (d_model,), jnp.float32)}

    ks = jax.random.split(key, 9)
    return {
        "norm_kv": ln_init(ks[0]),
        "norm_q": ln_init(ks[1]),
        "attn": {"q": linear_init(ks[2], d_model, d_model),
                 "k": linear_init(ks[3], d_model, d_model),
                 "v": linear_init(ks[4], d_model, d_model),
                 "o": linear_init(ks[5], d_model, d_model)},
        "ffn": {"norm": ln_init(ks[6]),
                "w1": linear_init(ks[7], d_model, d_ff),
                "w2": linear_init(ks[8], d_ff, d_model)},
    }


# ------------------------------- Reference ------------------------------------

def reference_fuse_feature_block(params, memory, q, n_head, act="gelu"):
    B, S_kv, D = memory.shape
    S_q = q.shape[1]
    dk = D // n_head

    def ln(p, x):
        mu = jnp.mean(x, -1, keepdims=True)
        var = jnp.mean((x - mu) ** 2, -1, keepdims=True)
        return (x - mu) / jnp.sqrt(var + 1e-5) * p["g"] + p["b"]

    def lin(p, x):
        return x @ p["W"].T + p["b"]

    x_ = ln(params["norm_kv"], memory)
    q_ = ln(params["norm_q"], q)
    mha = params["attn"]
    q4 = lin(mha["q"], q_).reshape(B, S_q, n_head, dk).transpose(0, 2, 1, 3)
    k4 = lin(mha["k"], x_).reshape(B, S_kv, n_head, dk).transpose(0, 2, 1, 3)
    v4 = lin(mha["v"], x_).reshape(B, S_kv, n_head, dk).transpose(0, 2, 1, 3)
    scores = jnp.einsum("bhqd,bhkd->bhqk", q4, k4) / math.sqrt(dk)
    attn = jax.nn.softmax(scores, axis=-1)
    ctx = jnp.einsum("bhqk,bhkd->bhqd", attn, v4)
    attn_out = lin(mha["o"], ctx.transpose(0, 2, 1, 3).reshape(B, S_q, D))

    ffn = params["ffn"]
    xn = ln(ffn["norm"], attn_out)
    h = lin(ffn["w1"], xn)
    if act.lower() == "gelu":
        h = 0.5 * h * (1.0 + jax.scipy.special.erf(h / math.sqrt(2.0)))
    else:
        h = jnp.maximum(h, 0.0)
    out = lin(ffn["w2"], h) + attn_out
    return out, attn


# --------------------------------- Main ---------------------------------------

if __name__ == "__main__":
    B, S_kv, S_q = 2, 16, 8
    d_model, n_head, d_ff = 32, 4, 64
    act = "gelu"

    root = jax.random.PRNGKey(0)
    km, kq, kp = jax.random.split(root, 3)
    memory = jax.random.normal(km, (B, S_kv, d_model), jnp.float32)
    q_in = jax.random.normal(kq, (B, S_q, d_model), jnp.float32)
    params = init_params(kp, d_model, d_ff)

    ref_out, ref_attn = reference_fuse_feature_block(params, memory, q_in, n_head, act)

    # --- f32 operand path (exact softmax reciprocal, strict check) ---
    prep_f32 = prepare_params(params, n_head=n_head, compute_dtype=jnp.float32)
    out, attn = fuse_feature_block(prep_f32, memory, q_in, act=act,
                                   compute_dtype=jnp.float32, attn_dtype=jnp.float32)
    out = jax.block_until_ready(out)
    attn = jax.block_until_ready(attn)
    assert out.shape == (B, S_q, d_model)
    assert attn.shape == (B, n_head, S_q, S_kv)
    assert jnp.allclose(out, ref_out, atol=5e-3, rtol=5e-3), \
        float(jnp.max(jnp.abs(out - ref_out)))
    assert jnp.allclose(attn, ref_attn, atol=5e-3, rtol=5e-3), \
        float(jnp.max(jnp.abs(attn - ref_attn)))

    # --- bf16 MXU-operand path (recommended on v5e/v6e/v7x), bf16 attn output, loose check ---
    prep_bf16 = prepare_params(params, n_head=n_head, compute_dtype=jnp.bfloat16)
    out_bf, attn_bf = fuse_feature_block(prep_bf16, memory, q_in, act=act,
                                         compute_dtype=jnp.bfloat16,
                                         attn_dtype=jnp.bfloat16)
    out_bf = jax.block_until_ready(out_bf)
    attn_bf = jax.block_until_ready(attn_bf)
    assert jnp.allclose(out_bf.astype(jnp.float32), ref_out, atol=1e-1, rtol=1e-1), \
        float(jnp.max(jnp.abs(out_bf.astype(jnp.float32) - ref_out)))
    assert jnp.allclose(attn_bf.astype(jnp.float32), ref_attn, atol=5e-2, rtol=5e-2), \
        float(jnp.max(jnp.abs(attn_bf.astype(jnp.float32) - ref_attn)))

    print("KERNEL_OK")
</pallas_src>

<mosaic_0001>
module attributes {stable_mosaic.version = 11 : i64} {
  func.func @kernel(%arg0: i32, %arg1: i32, %arg2: memref<16x32xf32, #tpu.memory_space<vmem>>, %arg3: memref<1x32xf32, #tpu.memory_space<vmem>>, %arg4: memref<1x32xf32, #tpu.memory_space<vmem>>, %arg5: memref<32x32xf32, #tpu.memory_space<vmem>>, %arg6: memref<1x32xf32, #tpu.memory_space<vmem>>, %arg7: memref<16x32xf32, #tpu.memory_space<vmem>>) attributes {dimension_semantics = [#tpu.dimension_semantics<parallel>, #tpu.dimension_semantics<parallel>], iteration_bounds = array<i64: 1, 1>, scalar_prefetch = 0 : i64, scratch_operands = 0 : i64, tpu.core_type = #tpu.core_type<tc>, window_params = [{transform_indices = @transform_0, window_bounds = array<i64: 16, 32>}, {pipeline_mode = #tpu.pipeline_mode<synchronous>, transform_indices = @transform_1, window_bounds = array<i64: 1, 32>}, {pipeline_mode = #tpu.pipeline_mode<synchronous>, transform_indices = @transform_2, window_bounds = array<i64: 1, 32>}, {transform_indices = @transform_3, window_bounds = array<i64: 32, 32>}, {transform_indices = @transform_4, window_bounds = array<i64: 1, 32>}, {transform_indices = @transform_5, window_bounds = array<i64: 16, 32>}]} {
    %c0 = arith.constant 0 : index
    %c0_0 = arith.constant 0 : index
    %0 = vector.load %arg2[%c0, %c0_0] : memref<16x32xf32, #tpu.memory_space<vmem>>, vector<16x32xf32>
    %c0_1 = arith.constant 0 : index
    %c0_2 = arith.constant 0 : index
    %1 = vector.load %arg3[%c0_1, %c0_2] : memref<1x32xf32, #tpu.memory_space<vmem>>, vector<1x32xf32>
    %c0_3 = arith.constant 0 : index
    %c0_4 = arith.constant 0 : index
    %2 = vector.load %arg4[%c0_3, %c0_4] : memref<1x32xf32, #tpu.memory_space<vmem>>, vector<1x32xf32>
    %cst = arith.constant dense<0.000000e+00> : vector<16xf32>
    %3 = vector.multi_reduction <add>, %0, %cst [1] : vector<16x32xf32> to vector<16xf32>
    %4 = vector.shape_cast %3 : vector<16xf32> to vector<16x1xf32>
    %cst_5 = arith.constant 3.200000e+01 : f32
    %5 = vector.broadcast %cst_5 : f32 to vector<16x1xf32>
    %6 = arith.divf %4, %5 : vector<16x1xf32>
    %7 = vector.broadcast %6 : vector<16x1xf32> to vector<16x32xf32>
    %8 = arith.subf %0, %7 : vector<16x32xf32>
    %9 = arith.mulf %8, %8 : vector<16x32xf32>
    %cst_6 = arith.constant dense<0.000000e+00> : vector<16xf32>
    %10 = vector.multi_reduction <add>, %9, %cst_6 [1] : vector<16x32xf32> to vector<16xf32>
    %11 = vector.shape_cast %10 : vector<16xf32> to vector<16x1xf32>
    %cst_7 = arith.constant 3.200000e+01 : f32
    %12 = vector.broadcast %cst_7 : f32 to vector<16x1xf32>
    %13 = arith.divf %11, %12 : vector<16x1xf32>
    %cst_8 = arith.constant 9.99999974E-6 : f32
    %14 = vector.broadcast %cst_8 : f32 to vector<16x1xf32>
    %15 = arith.addf %13, %14 : vector<16x1xf32>
    %16 = math.rsqrt %15 : vector<16x1xf32>
    %17 = vector.broadcast %16 : vector<16x1xf32> to vector<16x32xf32>
    %18 = arith.mulf %8, %17 : vector<16x32xf32>
    %19 = vector.broadcast %1 : vector<1x32xf32> to vector<16x32xf32>
    %20 = arith.mulf %18, %19 : vector<16x32xf32>
    %21 = vector.broadcast %2 : vector<1x32xf32> to vector<16x32xf32>
    %22 = arith.addf %20, %21 : vector<16x32xf32>
    %c0_9 = arith.constant 0 : index
    %c0_10 = arith.constant 0 : index
    %23 = vector.load %arg5[%c0_9, %c0_10] : memref<32x32xf32, #tpu.memory_space<vmem>>, vector<32x32xf32>
    %cst_11 = arith.constant dense<0.000000e+00> : vector<16x32xf32>
    %24 = tpu.matmul %22, %23, %cst_11 {dimension_numbers = #tpu.dot_dimension_numbers<[1], [0], [0], [1], [0, 0, 1, 1], [], []>} : vector<16x32xf32>, vector<32x32xf32>, vector<16x32xf32> -> vector<16x32xf32>
    %c0_12 = arith.constant 0 : index
    %c0_13 = arith.constant 0 : index
    %25 = vector.load %arg6[%c0_12, %c0_13] : memref<1x32xf32, #tpu.memory_space<vmem>>, vector<1x32xf32>
    %26 = vector.broadcast %25 : vector<1x32xf32> to vector<16x32xf32>
    %27 = arith.addf %24, %26 : vector<16x32xf32>
    %c0_14 = arith.constant 0 : index
    %c0_15 = arith.constant 0 : index
    %28 = vector.load %arg7[%c0_14, %c0_15] : memref<16x32xf32, #tpu.memory_space<vmem>>, vector<16x32xf32>
    tpu.vector_store %arg7[%c0_14, %c0_15], %27 {strides = array<i32>} : memref<16x32xf32, #tpu.memory_space<vmem>>, vector<16x32xf32>,
    return
  }
  func.func @transform_0(%arg0: i32, %arg1: i32) -> (i32, i32) {
    %c0_i32 = arith.constant 0 : i32
    %c0_i32_0 = arith.constant 0 : i32
    return %arg0, %c0_i32 : i32, i32
  }
  func.func @transform_1(%arg0: i32, %arg1: i32) -> (i32, i32) {
    %c0_i32 = arith.constant 0 : i32
    %c0_i32_0 = arith.constant 0 : i32
    %c0_i32_1 = arith.constant 0 : i32
    return %c0_i32, %c0_i32_0 : i32, i32
  }
  func.func @transform_2(%arg0: i32, %arg1: i32) -> (i32, i32) {
    %c0_i32 = arith.constant 0 : i32
    %c0_i32_0 = arith.constant 0 : i32
    %c0_i32_1 = arith.constant 0 : i32
    return %c0_i32, %c0_i32_0 : i32, i32
  }
  func.func @transform_3(%arg0: i32, %arg1: i32) -> (i32, i32) {
    %c0_i32 = arith.constant 0 : i32
    %c0_i32_0 = arith.constant 0 : i32
    return %c0_i32, %arg1 : i32, i32
  }
  func.func @transform_4(%arg0: i32, %arg1: i32) -> (i32, i32) {
    %c0_i32 = arith.constant 0 : i32
    %c0_i32_0 = arith.constant 0 : i32
    return %c0_i32, %arg1 : i32, i32
  }
  func.func @transform_5(%arg0: i32, %arg1: i32) -> (i32, i32) {
    %c0_i32 = arith.constant 0 : i32
    return %arg0, %arg1 : i32, i32
  }
}

</mosaic_0001>

<bundles_post_ra>
// kernel: tpu_custom_call.1
= control target key start
LH: loop header
LB: loop body
LE: loop exit
PB: predicated region body
PF: predicated region fallthrough
CT: control target
= control target key end

     0   :  { %10 = vsyncpa [#allocation3], 0  ;;  %s553_s0 = inlined_call_operand.hbm [shape: f32[16,32], index: 0, kind: input, shape index: {}]   ;;  %s554_s1 = inlined_call_operand.hbm [shape: f32[1,32], index: 1, kind: input, shape index: {}]   ;;  %s555_s2 = inlined_call_operand.hbm [shape: f32[1,32], index: 2, kind: input, shape index: {}]   ;;  %s556_s3 = inlined_call_operand.hbm [shape: f32[32,32], index: 3, kind: input, shape index: {}]   ;;  %s557_s4 = inlined_call_operand.hbm [shape: f32[1,32], index: 4, kind: input, shape index: {}]   ;;  %s558_s5 = inlined_call_operand.hbm [shape: f32[16,32], index: 5, kind: output, shape index: {}]  }
   0x1   :  { %11 = vsyncpa [#allocation6], 0 }
   0x2   :  { %12 = vsyncpa [#allocation9], 0 }
   0x3   :  { %13 = vsyncpa [#allocation4], 0  ;;  %s426_s18 = smov [#allocation5]   ;;  %s286_s22 = scalar_lea.hbm %s554_s1, 16 }
   0x4   :  { %s32_s19 = sshll.u32 %s426_s18, 4  ;;  %p287_p0 = scmp.ne.s32.totalorder %s554_s1, %s286_s22  ;;  %s33_s19 = int_to_ptr.vmem [resolvable:$true] %s32_s19 }
   0x5   :  { %p290_p1 = scmp.lt.u32.totalorder %s286_s22, %s554_s1 }
   0x7   :  { %p292_p2 = pnand %p290_p1, %p287_p0 }
   0x9   :  { %295 = shalt.err (!%p292_p2)
}
   0xa   :  { %s296_s27 = scalar_lea.vmem %s33_s19, 16  ;;  %s300_s28 = scalar_lea.vmem %s33_s19, 32 }
   0xb   :  { %p297_p3 = scmp.ne.s32.totalorder %s33_s19, %s296_s27  ;;  %p301_p4 = scmp.lt.s32.totalorder %s33_s19, %s33_s19 }
   0xc   :  { %p302_p5 = scmp.lt.s32.totalorder %s300_s28, %s296_s27 }
   0xe   :  { %p303_p6 = por %p302_p5, %p301_p4 }
  0x10   :  { %p304_p7 = pnand %p303_p6, %p297_p3 }
  0x12   :  { %307 = shalt.err (!%p304_p7)
}
  0x13   :  { %35 = dma.hbm_to_vmem [thread:$0]  %s554_s1, 16, %s33_s19, [#allocation6]  }
  0x14   :  { %s427_s6 = smov [#allocation8]   ;;  %s428_s8 = smov [#allocation2]  }
  0x15   :  { %s51_s7 = sshll.u32 %s427_s6, 4  ;;  %s19_s9 = sshll.u32 %s428_s8, 4  ;;  %s52_s7 = int_to_ptr.vmem [resolvable:$true] %s51_s7  ;;  %s20_s9 = int_to_ptr.vmem [resolvable:$true] %s19_s9 }
  0x16   :  { %s308_s12 = scalar_lea.hbm %s556_s3, 512 }
  0x17   :  { %p309_p8 = scmp.ne.s32.totalorder %s556_s3, %s308_s12  ;;  %p312_p9 = scmp.lt.u32.totalorder %s308_s12, %s556_s3 }
  0x19   :  { %p314_p10 = pnand %p312_p9, %p309_p8 }
  0x1b   :  { %317 = shalt.err (!%p314_p10)
}
  0x1c   :  { %s318_s1 = scalar_lea.vmem %s52_s7, 512  ;;  %p323_p12 = scmp.lt.s32.totalorder %s52_s7, %s52_s7 }
  0x1d   :  { %p319_p11 = scmp.ne.s32.totalorder %s52_s7, %s318_s1  ;;  %p324_p13 = scmp.lt.s32.totalorder %s318_s1, %s318_s1 }
  0x1f   :  { %p325_p0 = por %p324_p13, %p323_p12 }
  0x21   :  { %p326_p1 = pnand %p325_p0, %p319_p11 }
  0x23   :  { %329 = shalt.err (!%p326_p1)
}
  0x24   :  { %s429_s17 = smov 128   ;;  %s430_s18 = smov 8  }
  0x25   :  { %57 = dma.hbm_to_vmem [thread:$0]  %s556_s3, 512, %s52_s7, [#allocation9], %s429_s17, %s429_s17, %s430_s18  }
  0x26   :  { %s330_s23 = scalar_lea.hbm %s553_s0, 256 }
  0x27   :  { %p331_p2 = scmp.ne.s32.totalorder %s553_s0, %s330_s23  ;;  %p334_p3 = scmp.lt.u32.totalorder %s330_s23, %s553_s0 }
  0x29   :  { %p336_p4 = pnand %p334_p3, %p331_p2 }
  0x2b   :  { %339 = shalt.err (!%p336_p4)
}
  0x2c   :  { %s340_s28 = scalar_lea.vmem %s20_s9, 256  ;;  %p345_p6 = scmp.lt.s32.totalorder %s20_s9, %s20_s9 }
  0x2d   :  { %p341_p5 = scmp.ne.s32.totalorder %s20_s9, %s340_s28  ;;  %p346_p7 = scmp.lt.s32.totalorder %s340_s28, %s340_s28 }
  0x2f   :  { %p347_p8 = por %p346_p7, %p345_p6 }
  0x31   :  { %p348_p9 = pnand %p347_p8, %p341_p5 }
  0x33   :  { %351 = shalt.err (!%p348_p9)
}
  0x34   :  { %25 = dma.hbm_to_vmem [thread:$0]  %s553_s0, 256, %s20_s9, [#allocation3], %s429_s17, %s429_s17, %s430_s18  }
  0x35   :  { %s431_s30 = smov [#allocation7]   ;;  %s432_s7 = smov [#allocation10]  }
  0x36   :  { %s42_s6 = sshll.u32 %s431_s30, 4  ;;  %s64_s8 = sshll.u32 %s432_s7, 4  ;;  %s43_s6 = int_to_ptr.vmem [resolvable:$true] %s42_s6  ;;  %s65_s8 = int_to_ptr.vmem [resolvable:$true] %s64_s8 }
  0x37   :  { %s352_s12 = scalar_lea.hbm %s555_s2, 16 }
  0x38   :  { %p353_p10 = scmp.ne.s32.totalorder %s555_s2, %s352_s12  ;;  %p356_p11 = scmp.lt.u32.totalorder %s352_s12, %s555_s2 }
  0x3a   :  { %p358_p12 = pnand %p356_p11, %p353_p10 }
  0x3c   :  { %361 = shalt.err (!%p358_p12)
}
  0x3d   :  { %s362_s0 = scalar_lea.vmem %s43_s6, 16  ;;  %s366_s9 = scalar_lea.vmem %s43_s6, 32 }
  0x3e   :  { %p363_p13 = scmp.ne.s32.totalorder %s43_s6, %s362_s0  ;;  %p367_p0 = scmp.lt.s32.totalorder %s43_s6, %s43_s6 }
  0x3f   :  { %p368_p1 = scmp.lt.s32.totalorder %s366_s9, %s362_s0 }
  0x41   :  { %p369_p2 = por %p368_p1, %p367_p0 }
  0x43   :  { %p370_p3 = pnand %p369_p2, %p363_p13 }
  0x45   :  { %373 = shalt.err (!%p370_p3)
}
  0x46   :  { %45 = dma.hbm_to_vmem [thread:$0]  %s555_s2, 16, %s43_s6, [#allocation6]  }
  0x47   :  { %s374_s22 = scalar_lea.hbm %s557_s4, 16 }
  0x48   :  { %p375_p4 = scmp.ne.s32.totalorder %s557_s4, %s374_s22  ;;  %p378_p5 = scmp.lt.u32.totalorder %s374_s22, %s557_s4 }
  0x4a   :  { %p380_p6 = pnand %p378_p5, %p375_p4 }
  0x4c   :  { %383 = shalt.err (!%p380_p6)
}
  0x4d   :  { %s384_s27 = scalar_lea.vmem %s65_s8, 16  ;;  %s388_s28 = scalar_lea.vmem %s65_s8, 32 }
  0x4e   :  { %p385_p7 = scmp.ne.s32.totalorder %s65_s8, %s384_s27  ;;  %p389_p8 = scmp.lt.s32.totalorder %s65_s8, %s65_s8 }
  0x4f   :  { %p390_p9 = scmp.lt.s32.totalorder %s388_s28, %s384_s27 }
  0x51   :  { %p391_p10 = por %p390_p9, %p389_p8 }
  0x53   :  { %p392_p11 = pnand %p391_p10, %p385_p7 }
  0x55   :  { %395 = shalt.err (!%p392_p11)
}
  0x56   :  { %67 = dma.hbm_to_vmem [thread:$0]  %s557_s4, 16, %s65_s8, [#allocation9]  }
  0x57   :  { %418 = dma.done.wait [#allocation3], 256  }
  0x58   :  { %419 = vsyncadd [#allocation3], 4294967040 }
  0x59   :  { %420 = dma.done.wait [#allocation6], 32  }
  0x5a   :  { %421 = vsyncadd [#allocation6], 4294967264 }
  0x5b   :  { %422 = dma.done.wait [#allocation9], 528  }
  0x5c   :  { %423 = vsyncadd [#allocation9], 4294966768  ;;  %vm87_vm0 = vcmask 261120   ;;  %v83_v0 = vld [vmem:[#allocation2] sm:$0xff]  ;;  %v84_v1 = vld [vmem:[#allocation2 + $0x8] sm:$0xff]  ;;  %s433_s4 = smov [#allocation11]  }
  0x5d   :  { %v88_v2 = vsel %vm87_vm0, %v83_v0, 0.0  ;;  %v91_v3 = vsel %vm87_vm0, %v84_v1, 0.0  ;;  %v131_v14 = vld [vmem:[#allocation8] sm:$0xff]  ;;  %v132_v15 = vld [vmem:[#allocation8 + $0x8] sm:$0xff]  ;;  %v133_v16 = vld [vmem:[#allocation8 + $0x10] sm:$0xff]  ;;  %s230_s29 = sshll.u32 %s433_s4, 4  ;;  %s231_s29 = int_to_ptr.vmem [resolvable:$true] %s230_s29 }
  0x5e   :  { %89 = vadd.xlane.f32.xlu0 %v88_v2  ;;  %v266_v17 = vpack.c.bf16 %v132_v15, %v131_v14  ;;  %v134_v18 = vld [vmem:[#allocation8 + $0x18] sm:$0xff]  ;;  %v246_v36 = vld [vmem:[#allocation10] ss:$0 sm:$0xff]  ;;  %s396_s30 = scalar_lea.vmem %s231_s29, 256  ;;  %p401_p13 = scmp.lt.s32.totalorder %s231_s29, %s231_s29 }
  0x5f   :  { %v270_v19 = vpack.c.bf16 %v134_v18, %v133_v16  ;;  %v244_v27 = vld [vmem:[#allocation5] ss:$0 sm:$0xff]  ;;  %v245_v29 = vld [vmem:[#allocation7] ss:$0 sm:$0xff]  ;;  %p397_p12 = scmp.ne.s32.totalorder %s231_s29, %s396_s30  ;;  %p402_p0 = scmp.lt.s32.totalorder %s396_s30, %s396_s30 }
  0x60   :  { %267 = vmatprep.subr.bf16.mxu0 %v266_v17 }
  0x61   :  { %269 = vmatpush3.bf16.msra.mxu0 %v266_v17  ;;  %p403_p1 = por %p402_p0, %p401_p13 }
  0x62   :  { %92 = vadd.xlane.f32.xlu0 %v91_v3  ;;  %271 = vmatprep.subr.bf16.mxu0 %v270_v19 }
  0x63   :  { %p404_p2 = pnand %p403_p1, %p397_p12 }
  0x65   :  { %273 = vmatpush3.bf16.msra.mxu0 %v270_v19 }
  0xeb   :  { %v90_v4 = vpop.xlane.xlu0 %89 }
  0xec   :  { %v95_v5 = vmul.f32 0.03125, %v90_v4 }
  0xee   :  { %v97_v6 = vsub.f32 %v83_v0, %v95_v5 }
  0xef   :  { %v93_v7 = vpop.xlane.xlu0 %92 }
  0xf0   :  { %v96_v8 = vmul.f32 0.03125, %v93_v7  ;;  %v99_v9 = vmul.f32 %v97_v6, %v97_v6 }
  0xf2   :  { %v98_v10 = vsub.f32 %v84_v1, %v96_v8  ;;  %v101_v11 = vsel %vm87_vm0, %v99_v9, 0.0 }
  0xf3   :  { %102 = vadd.xlane.f32.xlu1 %v101_v11 }
  0xf4   :  { %v100_v12 = vmul.f32 %v98_v10, %v98_v10 }
  0xf6   :  { %v104_v13 = vsel %vm87_vm0, %v100_v12, 0.0 }
  0xf7   :  { %105 = vadd.xlane.f32.xlu1 %v104_v13 }
 0x180   :  { %v103_v20 = vpop.xlane.xlu1 %102 }
 0x181   :  { %v107_v21 = vmul.f32 0.03125, %v103_v20 }
 0x183   :  { %v109_v22 = vadd.f32 1e-05, %v107_v21 }
 0x184   :  { %v106_v23 = vpop.xlane.xlu1 %105 }
 0x185   :  { %282 = vrsqrt.f32 %v109_v22  ;;  %v108_v24 = vmul.f32 0.03125, %v106_v23 }
 0x187   :  { %v110_v25 = vadd.f32 1e-05, %v108_v24 }
 0x189   :  { %284 = vrsqrt.f32 %v110_v25 }
 0x18f   :  { %v283_v26 = vpop.eup %282 }
 0x190   :  { %v113_v28 = vmul.f32 %v283_v26, %v97_v6 }
 0x192   :  { %v121_v30 = vmul.f32 %v244_v27, %v113_v28 }
 0x193   :  { %v285_v31 = vpop.eup %284 }
 0x194   :  { %v114_v32 = vmul.f32 %v285_v31, %v98_v10  ;;  %v129_v33 = vadd.f32 %v245_v29, %v121_v30 }
 0x196   :  { %v122_v34 = vmul.f32 %v244_v27, %v114_v32  ;;  %263 = vmatprep.mubr.msk.f32.mxu0 %vm87_vm0, %v129_v33 }
 0x198   :  { %v130_v35 = vadd.f32 %v245_v29, %v122_v34 }
 0x19a   :  { %264 = vmatmul.mubr.msk.f32.vlgmr.msra.gmra.mrb[0].mxu0 %vm87_vm0, %v130_v35 }
 0x26d   :  { %v265_v37 = vpop.f32.mrb[0].mxu0 }
 0x26e   :  { %v220_v38 = vadd.f32 %v265_v37, %v246_v36  ;;  %v214_v39 = vpop.f32.mrb[1].mxu0 }
 0x26f   :  { %v215_v40 = vadd.f32 %v246_v36, %v214_v39 }
 0x270   :  { %224 = vst.msk [vmem:[#allocation11 + $0x8] sm:$0xff] %vm87_vm0, %v220_v38 }
 0x271   :  { %223 = vst.msk [vmem:[#allocation11] sm:$0xff] %vm87_vm0, %v215_v40 }
 0x272   :  { %407 = shalt.err (!%p404_p2)
}
 0x273   :  { %s408_s8 = scalar_lea.hbm %s558_s5, 256 }
 0x274   :  { %p409_p3 = scmp.ne.s32.totalorder %s558_s5, %s408_s8  ;;  %p412_p4 = scmp.lt.u32.totalorder %s408_s8, %s558_s5 }
 0x276   :  { %p414_p5 = pnand %p412_p4, %p409_p3 }
 0x278   :  { %417 = shalt.err (!%p414_p5)
}
 0x279   :  { %236 = dma.vmem_to_hbm [thread:$0]  %s231_s29, 256, %s558_s5, [#allocation4], %s429_s17, %s429_s17, %s430_s18  }
 0x27a   :  { %424 = dma.done.wait [#allocation4], 256  }
 0x27b   :  { %425 = vsyncadd [#allocation4], 4294967040 }
 0x27c   :  { %240 = vsyncpa [#allocation3], 1 }
 0x27d   :  { %241 = vsyncpa [#allocation6], 1 }
 0x27e   :  { %242 = vsyncpa [#allocation9], 1 }
 0x27f   :  { %243 = vsyncpa [#allocation4], 1 }

</bundles_post_ra>
